<compile_context>
chip_gen: v7x
topology: tpu7x:2x2x1
jax: 0.10.0
libtpu: 0.0.40
codegen_flags: <defaults>
</compile_context>

<pallas_src>
import jax
import jax.numpy as jnp
from jax.experimental import pallas as pl
from jax.experimental.pallas import tpu as pltpu


def _round_up(n: int, m: int) -> int:
    return ((n + m - 1) // m) * m


def linear_sub_relu_kernel(params_ref, x_ref, o_ref):
    # params_ref: SMEM (3,) = [w0, w1, bias - other]
    # x_ref:      VMEM (2, TB)  -- batch on the lane axis
    # o_ref:      VMEM (1, TB)
    w0 = params_ref[0]
    w1 = params_ref[1]
    shift = params_ref[2]  # bias - other folded into one scalar

    # Pure lane-parallel VPU math: 2-term multiply-add, no cross-lane reduce.
    v = x_ref[0:1, :] * w0 + x_ref[1:2, :] * w1 + shift
    o_ref[...] = jnp.maximum(v, 0.0)  # relu with immediate zero


def model_forward(x, weight, bias, other, *, max_tile_lanes=65536):
    """x: (B, 2) f32, weight: (1, 2) f32, bias: (1,) f32, other: (1, 1) f32."""
    B, in_features = x.shape
    assert in_features == 2
    dtype = x.dtype

    # Fold bias - other into a single scalar; pack scalars for SMEM.
    params = jnp.concatenate(
        [
            weight.reshape(-1).astype(jnp.float32),
            (bias.reshape(-1) - other.reshape(-1)).astype(jnp.float32),
        ]
    )  # (3,) = [w0, w1, bias - other]

    # Lane-dense layout: batch on the last (128-lane) axis.
    xT = x.T  # (2, B)

    # Batch tile: multiple of 128 lanes, capped so double-buffered
    # input+output stays ~1.5 MiB (safe on v5e/v6e/v7x scoped VMEM limits).
    tb = min(max_tile_lanes, _round_up(B, 128))
    b_padded = _round_up(B, tb)
    if b_padded != B:
        xT = jnp.pad(xT, ((0, 0), (0, b_padded - B)))

    out = pl.pallas_call(
        linear_sub_relu_kernel,
        out_shape=jax.ShapeDtypeStruct((1, b_padded), dtype),
        grid=(b_padded // tb,),
        in_specs=[
            pl.BlockSpec(memory_space=pltpu.MemorySpace.SMEM),  # scalar params
            pl.BlockSpec((2, tb), lambda i: (0, i)),             # x^T tiles
        ],
        out_specs=pl.BlockSpec((1, tb), lambda i: (0, i)),
        compiler_params=pltpu.CompilerParams(
            dimension_semantics=("parallel",),
        ),
    )(params, xT)

    return out[0, :B].reshape(B, 1)


if __name__ == "__main__":
    key = jax.random.PRNGKey(0)
    kx, kw, kb, kbig = jax.random.split(key, 4)

    # Inputs consistent with the module: x1 ~ randn(1, 2)
    x1 = jax.random.normal(kx, (1, 2), dtype=jnp.float32)

    # Deterministic Linear(2, 1) parameters (torch-style uniform(-1/sqrt(2), 1/sqrt(2)))
    bound = 1.0 / jnp.sqrt(2.0)
    weight = jax.random.uniform(kw, (1, 2), jnp.float32, -bound, bound)
    bias = jax.random.uniform(kb, (1,), jnp.float32, -bound, bound)

    other = jnp.array([[0.7895]], dtype=jnp.float32)

    def ref_fn(x):
        return jnp.maximum(x @ weight.T + bias - other, 0.0)

    # Module-faithful B == 1 case.
    out1 = jax.block_until_ready(model_forward(x1, weight, bias, other))
    assert out1.shape == (1, 1)
    assert jnp.allclose(out1, ref_fn(x1), atol=1e-5, rtol=1e-5)

    # Larger batch (non-multiple of 128) to exercise lane-dense tiling + padding.
    xb = jax.random.normal(kbig, (1000, 2), dtype=jnp.float32)
    outb = jax.block_until_ready(model_forward(xb, weight, bias, other))
    assert outb.shape == (1000, 1)
    assert jnp.allclose(outb, ref_fn(xb), atol=1e-5, rtol=1e-5)

    print("KERNEL_OK")
</pallas_src>

<mosaic_0001>
module attributes {stable_mosaic.version = 11 : i64} {
  func.func @linear_sub_relu_kernel(%arg0: i32, %arg1: memref<3xf32, #tpu.memory_space<smem>>, %arg2: memref<2x128xf32, #tpu.memory_space<vmem>>, %arg3: memref<1x128xf32, #tpu.memory_space<vmem>>) attributes {dimension_semantics = [#tpu.dimension_semantics<parallel>], iteration_bounds = array<i64: 1>, scalar_prefetch = 0 : i64, scratch_operands = 0 : i64, tpu.core_type = #tpu.core_type<tc>, window_params = [{transform_indices = @transform_0, window_bounds = array<i64: 3>}, {transform_indices = @transform_1, window_bounds = array<i64: 2, 128>}, {transform_indices = @transform_2, window_bounds = array<i64: 1, 128>}]} {
    %c0 = arith.constant 0 : index
    %0 = memref.load %arg1[%c0] : memref<3xf32, #tpu.memory_space<smem>>
    %c1 = arith.constant 1 : index
    %1 = memref.load %arg1[%c1] : memref<3xf32, #tpu.memory_space<smem>>
    %c2 = arith.constant 2 : index
    %2 = memref.load %arg1[%c2] : memref<3xf32, #tpu.memory_space<smem>>
    %c0_0 = arith.constant 0 : index
    %c0_1 = arith.constant 0 : index
    %3 = vector.load %arg2[%c0_0, %c0_1] : memref<2x128xf32, #tpu.memory_space<vmem>>, vector<1x128xf32>
    %4 = vector.broadcast %0 : f32 to vector<1x128xf32>
    %5 = arith.mulf %3, %4 : vector<1x128xf32>
    %c1_2 = arith.constant 1 : index
    %c0_3 = arith.constant 0 : index
    %6 = vector.load %arg2[%c1_2, %c0_3] : memref<2x128xf32, #tpu.memory_space<vmem>>, vector<1x128xf32>
    %7 = vector.broadcast %1 : f32 to vector<1x128xf32>
    %8 = arith.mulf %6, %7 : vector<1x128xf32>
    %9 = arith.addf %5, %8 : vector<1x128xf32>
    %10 = vector.broadcast %2 : f32 to vector<1x128xf32>
    %11 = arith.addf %9, %10 : vector<1x128xf32>
    %cst = arith.constant 0.000000e+00 : f32
    %12 = vector.broadcast %cst : f32 to vector<1x128xf32>
    %13 = arith.maximumf %11, %12 : vector<1x128xf32>
    %c0_4 = arith.constant 0 : index
    %c0_5 = arith.constant 0 : index
    %14 = vector.load %arg3[%c0_4, %c0_5] : memref<1x128xf32, #tpu.memory_space<vmem>>, vector<1x128xf32>
    tpu.vector_store %arg3[%c0_4, %c0_5], %13 {strides = array<i32>} : memref<1x128xf32, #tpu.memory_space<vmem>>, vector<1x128xf32>,
    return
  }
  func.func @transform_0(%arg0: i32) -> i32 {
    %c0_i32 = arith.constant 0 : i32
    %c0_i32_0 = arith.constant 0 : i32
    return %c0_i32 : i32
  }
  func.func @transform_1(%arg0: i32) -> (i32, i32) {
    %c0_i32 = arith.constant 0 : i32
    %c0_i32_0 = arith.constant 0 : i32
    return %c0_i32, %arg0 : i32, i32
  }
  func.func @transform_2(%arg0: i32) -> (i32, i32) {
    %c0_i32 = arith.constant 0 : i32
    %c0_i32_0 = arith.constant 0 : i32
    return %c0_i32, %arg0 : i32, i32
  }
}

</mosaic_0001>

<bundles_post_ra>
// kernel: tpu_custom_call.1
= control target key start
LH: loop header
LB: loop body
LE: loop exit
PB: predicated region body
PF: predicated region fallthrough
CT: control target
= control target key end

     0   :  { %7 = vsyncpa [#allocation4], 0  ;;  %s139_s0 = inlined_call_operand.hbm [shape: f32[3], index: 0, kind: input, shape index: {}]   ;;  %s140_s1 = inlined_call_operand.vmem [shape: f32[2,128], index: 1, kind: input, shape index: {}]   ;;  %s141_s2 = inlined_call_operand.hbm [shape: f32[1,128], index: 2, kind: output, shape index: {}]  }
   0x1   :  { %8 = vsyncpa [#allocation3], 0  ;;  %s56_s11 = scalar_lea.hbm %s139_s0, 16 }
   0x2   :  { %p57_p0 = scmp.ne.s32.totalorder %s139_s0, %s56_s11  ;;  %p60_p1 = scmp.lt.u32.totalorder %s56_s11, %s139_s0 }
   0x4   :  { %p62_p2 = pnand %p60_p1, %p57_p0 }
   0x6   :  { %65 = shalt.err (!%p62_p2)
}
   0x7   :  { %s92_s16 = smov [#allocation2]  }
   0x8   :  { %16 = dma.hbm_to_smem %s139_s0, 16, %s92_s16, [#allocation4]  }
   0x9   :  { %88 = dma.done.wait [#allocation4], 16  }
   0xa   :  { %89 = vsyncadd [#allocation4], 4294967280 }
   0xb   :  { %22 = sfence }
   0xc   :  { %s23_s19 = sld [smem:[#allocation2]]  ;;  %s52_s20 = sld [smem:[#allocation2 + $0x1]]  ;;  %v26_v0 = vld [vmem:[%s140_s1] sm:$0x1]  ;;  %v29_v1 = vld [vmem:[%s140_s1 + $0x1] sm:$0x1] }
   0xd   :  { %s53_s21 = sld [smem:[#allocation2 + $0x2]]  ;;  %s93_s0 = smov [#allocation5]  }
   0xe   :  { %s43_s26 = sshll.u32 %s93_s0, 4  ;;  %s44_s26 = int_to_ptr.vmem [resolvable:$true] %s43_s26 }
   0xf   :  { %s66_s27 = scalar_lea.vmem %s44_s26, 16  ;;  %s70_s28 = scalar_lea.vmem %s44_s26, 32 }
  0x10   :  { %p67_p3 = scmp.ne.s32.totalorder %s44_s26, %s66_s27  ;;  %p71_p4 = scmp.lt.s32.totalorder %s44_s26, %s44_s26 }
  0x11   :  { %p72_p5 = scmp.lt.s32.totalorder %s70_s28, %s66_s27 }
  0x12   :  { %v27_v2 = vstv %s23_s19  ;;  %v30_v3 = vstv %s52_s20 }
  0x13   :  { %v28_v4 = vmul.f32 %v27_v2, %v26_v0  ;;  %v31_v5 = vmul.f32 %v30_v3, %v29_v1  ;;  %v33_v6 = vstv %s53_s21  ;;  %p73_p6 = por %p72_p5, %p71_p4 }
  0x15   :  { %v32_v7 = vadd.f32 %v31_v5, %v28_v4  ;;  %p74_p7 = pnand %p73_p6, %p67_p3 }
  0x17   :  { %v34_v8 = vadd.f32 %v33_v6, %v32_v7 }
  0x19   :  { %v35_v9 = vmax.f32 %v34_v8, 0.0 }
  0x1b   :  { %36 = vst [vmem:[#allocation5] sm:$0x1] %v35_v9 }
  0x1c   :  { %77 = shalt.err (!%p74_p7)
}
  0x1d   :  { %s78_s30 = scalar_lea.hbm %s141_s2, 16 }
  0x1e   :  { %p79_p8 = scmp.ne.s32.totalorder %s141_s2, %s78_s30  ;;  %p82_p9 = scmp.lt.u32.totalorder %s78_s30, %s141_s2 }
  0x20   :  { %p84_p10 = pnand %p82_p9, %p79_p8 }
  0x22   :  { %87 = shalt.err (!%p84_p10)
}
  0x23   :  { %46 = dma.vmem_to_hbm [thread:$0]  %s44_s26, 16, %s141_s2, [#allocation3]  }
  0x24   :  { %90 = dma.done.wait [#allocation3], 16  }
  0x25   :  { %91 = vsyncadd [#allocation3], 4294967280 }
  0x26   :  { %50 = vsyncpa [#allocation3], 1 }
  0x27   :  { %51 = vsyncpa [#allocation4], 1 }

</bundles_post_ra>
